<compile_context>
chip_gen: v7x
topology: tpu7x:2x2x1
jax: 0.10.0
libtpu: 0.0.40
codegen_flags: <defaults>
</compile_context>

<pallas_src>
import functools
import math

import numpy as np

import jax
import jax.numpy as jnp
from jax.experimental import pallas as pl
from jax.experimental.pallas import tpu as pltpu


def _round_up(x, m):
    return (x + m - 1) // m * m


def _cdiv(a, b):
    return (a + b - 1) // b


def _fused_kernel(x_ref, w_ref, b_ref, masks_ref, g_ref, gt_ref, out_ref, *,
                  shifts):
    """Fused Linear(trans||emiss) -> grouped softmax (temperature pre-folded).

    x_ref     : (tm, D)         bf16 embedding rows
    w_ref     : (D, Cp)         bf16 [W_trans | W_emiss | 0-pad] (already /T)
    b_ref     : (1, Cp)         f32  [b_trans | b_emiss | 0-pad] (already /T)
    masks_ref : (n_shifts, Cp)  f32 0/1: "lane (i - shift) mod Cp is in lane
                                i's softmax group" for each shift in `shifts`
    g_ref     : (Cp, Gp)        f32 one-hot group membership
    gt_ref    : (Gp, Cp)        f32 transpose of g_ref
    out_ref   : (tm, Cp)        fused softmax slab (trans | emiss | pad)
    """
    # Projection: single MXU push, bf16 operands, f32 accumulation.
    z = jnp.dot(x_ref[...], w_ref[...], preferred_element_type=jnp.float32)
    z = z + b_ref[...]

    # Per-group max, fully vectorized: bidirectional masked-roll doubling.
    # Masks are trace-time-shaped, host-precomputed constants; only the data
    # slab is rolled.  After shifts 1, 2, ... (both directions) every lane
    # holds the exact max of its own group (width H for trans, n_obs for
    # emiss).  The padding group (lanes C..Cp) may be wider than the covered
    # radius, but its logits are exactly 0 (padded W/b columns are 0), so its
    # partial max is still exact.
    m = z
    for k, s in enumerate(shifts):
        same = masks_ref[pl.ds(k, 1), :] > 0.5          # (1, Cp), bcast sublanes
        m = jnp.where(same, jnp.maximum(m, pltpu.roll(m, s, axis=1)), m)

    e = jnp.exp(z - m)                                  # one EUP pass, f32

    # Per-group sums broadcast back to every lane of the group via two thin
    # one-hot matmuls (linear in Cp) instead of a (Cp, Cp) block-diagonal.
    gsum = jnp.dot(e, g_ref[...], preferred_element_type=jnp.float32)       # (tm, Gp)
    denom = jnp.dot(gsum, gt_ref[...], preferred_element_type=jnp.float32)  # (tm, Cp)

    # Exact reciprocal: these probabilities feed HMM forward/Viterbi.
    out_ref[...] = (e * pl.reciprocal(denom, approx=False)).astype(out_ref.dtype)


def neural_module_forward(embs, w_t, b_t, w_e, b_e, *, n_hidden, n_obs,
                          temperature=1.0, tm=None, out_dtype=jnp.float32):
    """embs: (B,T,D); w_t: (D,H*H); b_t: (1,H*H); w_e: (D,H*O); b_e: (1,H*O).

    Returns (nn_trans (B,T,H,H), nn_emiss (B,T,H,O)) — softmax over the last
    dim, matching the PyTorch view(...) + softmax(dim=-1) / temperature
    semantics (GEMM runs in bf16, softmax in f32).
    """
    B, T, D = embs.shape
    M = B * T
    HH = n_hidden * n_hidden
    HO = n_hidden * n_obs
    C = HH + HO
    Cp = _round_up(C, 128)                 # lane-dense fused output width

    # Row tile: >= 2 grid steps once M > 8 (v7x has 2 TensorCores and
    # "parallel" does nothing on a 1-step grid); cap 1024 rows/step to
    # amortize per-step pipeline overhead on v5e/v6e (128 MiB VMEM).
    if tm is None:
        if M <= 8:
            tm = _round_up(max(M, 1), 8)
        else:
            tm = min(_round_up(_cdiv(M, 2), 8), 1024)
    Mp = _round_up(M, tm)

    # bf16 activations / weights for the MXU; f32 bias added post-matmul.
    x = embs.reshape(M, D)
    if Mp != M:
        x = jnp.pad(x, ((0, Mp - M), (0, 0)))
    x = x.astype(jnp.bfloat16)

    w = jnp.concatenate([w_t, w_e], axis=1).astype(jnp.float32)
    b = jnp.concatenate([b_t.reshape(1, -1), b_e.reshape(1, -1)],
                        axis=1).astype(jnp.float32)
    inv_t = 1.0 / float(temperature)
    if inv_t != 1.0:
        # Fold temperature into the one-time-loaded weights/bias instead of
        # multiplying the (tm, Cp) logits slab every grid step.
        w = w * inv_t
        b = b * inv_t
    if Cp != C:
        # Padded columns must be exactly zero (the kernel's pad-group softmax
        # relies on it).
        w = jnp.pad(w, ((0, 0), (0, Cp - C)))
        b = jnp.pad(b, ((0, 0), (0, Cp - C)))
    w = w.astype(jnp.bfloat16)

    # ---- host-side group layout constants (numpy, trace time) ----
    gid = np.empty((Cp,), np.int64)
    gid[:HH] = np.arange(HH) // n_hidden              # trans: H groups, width H
    gid[HH:C] = n_hidden + np.arange(HO) // n_obs     # emiss: H groups, width n_obs
    gid[C:] = 2 * n_hidden                            # padding lanes

    # Bidirectional doubling shifts covering the widest real group; one 0/1
    # mask row per shift, built with np.roll (same convention as pltpu.roll).
    max_group_width = max(n_hidden, n_obs)
    shifts = []
    s = 1
    while s < max_group_width:
        shifts.append(s % Cp)
        shifts.append((-s) % Cp)
        s *= 2
    if not shifts:                                    # degenerate 1-wide groups
        shifts = [0]
    shifts = tuple(shifts)
    masks = np.stack([(np.roll(gid, sh) == gid) for sh in shifts]
                     ).astype(np.float32)             # (n_shifts, Cp)

    # One-hot group membership and its transpose: group sums + broadcast-back
    # as two thin MXU matmuls (VMEM / flops linear in Cp).
    n_groups = int(gid.max()) + 1
    Gp = _round_up(n_groups, 128)
    g_mat = np.zeros((Cp, Gp), np.float32)
    g_mat[np.arange(Cp), gid] = 1.0
    gt_mat = np.ascontiguousarray(g_mat.T)

    kernel = functools.partial(_fused_kernel, shifts=shifts)

    out = pl.pallas_call(
        kernel,
        out_shape=jax.ShapeDtypeStruct((Mp, Cp), out_dtype),
        grid_spec=pltpu.PrefetchScalarGridSpec(
            num_scalar_prefetch=0,
            grid=(Mp // tm,),
            in_specs=[
                pl.BlockSpec((tm, D), lambda i: (i, 0)),            # x rows (bf16)
                pl.BlockSpec((D, Cp), lambda i: (0, 0)),            # fused weight (bf16)
                pl.BlockSpec((1, Cp), lambda i: (0, 0)),            # fused bias (f32)
                pl.BlockSpec((len(shifts), Cp), lambda i: (0, 0)),  # roll masks
                pl.BlockSpec((Cp, Gp), lambda i: (0, 0)),           # group one-hot
                pl.BlockSpec((Gp, Cp), lambda i: (0, 0)),           # its transpose
            ],
            out_specs=pl.BlockSpec((tm, Cp), lambda i: (i, 0)),
        ),
        compiler_params=pltpu.CompilerParams(
            dimension_semantics=("parallel",)),
    )(x, w, b, jnp.asarray(masks), jnp.asarray(g_mat), jnp.asarray(gt_mat))

    out = out[:M].astype(jnp.float32)
    nn_trans = out[:, :HH].reshape(B, T, n_hidden, n_hidden)
    nn_emiss = out[:, HH:C].reshape(B, T, n_hidden, n_obs)
    return nn_trans, nn_emiss


def _init_params(key, d_emb, n_hidden, n_obs):
    """Deterministic init mirroring the PyTorch module.

    nn.Linear weight is (out, in); stored transposed as (in, out) so the kernel
    computes x @ W. Weights: xavier_uniform with gain('relu')=sqrt(2). Biases:
    PyTorch default nn.Linear init U(-1/sqrt(fan_in), 1/sqrt(fan_in)).
    """
    k1, k2, k3, k4 = jax.random.split(key, 4)
    gain = math.sqrt(2.0)

    def xavier(k, fan_in, fan_out):
        bound = gain * math.sqrt(6.0 / (fan_in + fan_out))
        return jax.random.uniform(k, (fan_in, fan_out), jnp.float32,
                                  -bound, bound)

    hh = n_hidden * n_hidden
    ho = n_hidden * n_obs
    w_t = xavier(k1, d_emb, hh)
    w_e = xavier(k2, d_emb, ho)
    b_bound = 1.0 / math.sqrt(d_emb)
    b_t = jax.random.uniform(k3, (1, hh), jnp.float32, -b_bound, b_bound)
    b_e = jax.random.uniform(k4, (1, ho), jnp.float32, -b_bound, b_bound)
    return w_t, b_t, w_e, b_e


def _reference(embs, w_t, b_t, w_e, b_e, n_hidden, n_obs, temperature,
               match_bf16=False):
    """Pure-JAX reference.  match_bf16=True quantizes x/W exactly like the
    wrapper does (isolates the kernel check from bf16 rounding)."""
    B, T, D = embs.shape
    x = embs.reshape(B * T, D).astype(jnp.float32)
    if match_bf16:
        inv_t = 1.0 / float(temperature)
        x = x.astype(jnp.bfloat16).astype(jnp.float32)
        wt = (w_t * inv_t).astype(jnp.bfloat16).astype(jnp.float32)
        we = (w_e * inv_t).astype(jnp.bfloat16).astype(jnp.float32)
        zt = x @ wt + b_t * inv_t
        ze = x @ we + b_e * inv_t
    else:
        zt = (x @ w_t + b_t) / temperature
        ze = (x @ w_e + b_e) / temperature
    zt = zt.reshape(B, T, n_hidden, n_hidden)
    ze = ze.reshape(B, T, n_hidden, n_obs)
    return jax.nn.softmax(zt, axis=-1), jax.nn.softmax(ze, axis=-1)


if __name__ == "__main__":
    # Small shapes consistent with the module's forward.
    B, T = 2, 8          # batch, max_seq_length
    d_emb = 32
    n_hidden = 8
    n_obs = 16
    temperature = 1.0

    key = jax.random.PRNGKey(0)
    k_emb, k_par = jax.random.split(key)
    embs = jax.random.normal(k_emb, (B, T, d_emb), jnp.float32)
    w_t, b_t, w_e, b_e = _init_params(k_par, d_emb, n_hidden, n_obs)

    nn_trans, nn_emiss = neural_module_forward(
        embs, w_t, b_t, w_e, b_e,
        n_hidden=n_hidden, n_obs=n_obs, temperature=temperature)
    jax.block_until_ready((nn_trans, nn_emiss))

    # Reference 1: same bf16-quantized operands -> tight check of kernel math.
    ref_trans_q, ref_emiss_q = _reference(
        embs, w_t, b_t, w_e, b_e, n_hidden, n_obs, temperature, match_bf16=True)
    # Reference 2: pure f32 (PyTorch-equivalent) -> bounds bf16 quantization.
    ref_trans, ref_emiss = _reference(
        embs, w_t, b_t, w_e, b_e, n_hidden, n_obs, temperature, match_bf16=False)

    assert nn_trans.shape == (B, T, n_hidden, n_hidden)
    assert nn_emiss.shape == (B, T, n_hidden, n_obs)
    assert bool(jnp.all(jnp.isfinite(nn_trans)))
    assert bool(jnp.all(jnp.isfinite(nn_emiss)))
    assert jnp.allclose(nn_trans, ref_trans_q, atol=2e-3, rtol=2e-3)
    assert jnp.allclose(nn_emiss, ref_emiss_q, atol=2e-3, rtol=2e-3)
    assert jnp.allclose(nn_trans, ref_trans, atol=2e-2, rtol=2e-2)
    assert jnp.allclose(nn_emiss, ref_emiss, atol=2e-2, rtol=2e-2)
    # rows of each softmax must sum to ~1 (exact group max + exact reciprocal)
    assert jnp.allclose(nn_trans.sum(-1), 1.0, atol=1e-3)
    assert jnp.allclose(nn_emiss.sum(-1), 1.0, atol=1e-3)

    print("KERNEL_OK")
</pallas_src>

<mosaic_0001>
module attributes {stable_mosaic.version = 11 : i64} {
  func.func @_fused_kernel(%arg0: i32, %arg1: memref<8x32xbf16, #tpu.memory_space<vmem>>, %arg2: memref<32x256xbf16, #tpu.memory_space<vmem>>, %arg3: memref<1x256xf32, #tpu.memory_space<vmem>>, %arg4: memref<8x256xf32, #tpu.memory_space<vmem>>, %arg5: memref<256x128xf32, #tpu.memory_space<vmem>>, %arg6: memref<128x256xf32, #tpu.memory_space<vmem>>, %arg7: memref<8x256xf32, #tpu.memory_space<vmem>>) attributes {dimension_semantics = [#tpu.dimension_semantics<parallel>], iteration_bounds = array<i64: 2>, scalar_prefetch = 0 : i64, scratch_operands = 0 : i64, tpu.core_type = #tpu.core_type<tc>, window_params = [{transform_indices = @transform_0, window_bounds = array<i64: 8, 32>}, {pipeline_mode = #tpu.pipeline_mode<synchronous>, transform_indices = @transform_1, window_bounds = array<i64: 32, 256>}, {pipeline_mode = #tpu.pipeline_mode<synchronous>, transform_indices = @transform_2, window_bounds = array<i64: 1, 256>}, {pipeline_mode = #tpu.pipeline_mode<synchronous>, transform_indices = @transform_3, window_bounds = array<i64: 8, 256>}, {pipeline_mode = #tpu.pipeline_mode<synchronous>, transform_indices = @transform_4, window_bounds = array<i64: 256, 128>}, {pipeline_mode = #tpu.pipeline_mode<synchronous>, transform_indices = @transform_5, window_bounds = array<i64: 128, 256>}, {transform_indices = @transform_6, window_bounds = array<i64: 8, 256>}]} {
    %c0 = arith.constant 0 : index
    %c0_0 = arith.constant 0 : index
    %0 = vector.load %arg1[%c0, %c0_0] : memref<8x32xbf16, #tpu.memory_space<vmem>>, vector<8x32xbf16>
    %c0_1 = arith.constant 0 : index
    %c0_2 = arith.constant 0 : index
    %1 = vector.load %arg2[%c0_1, %c0_2] : memref<32x256xbf16, #tpu.memory_space<vmem>>, vector<32x256xbf16>
    %cst = arith.constant dense<0.000000e+00> : vector<8x256xf32>
    %2 = tpu.matmul %0, %1, %cst {dimension_numbers = #tpu.dot_dimension_numbers<[1], [0], [0], [1], [0, 0, 1, 1], [], []>} : vector<8x32xbf16>, vector<32x256xbf16>, vector<8x256xf32> -> vector<8x256xf32>
    %c0_3 = arith.constant 0 : index
    %c0_4 = arith.constant 0 : index
    %3 = vector.load %arg3[%c0_3, %c0_4] : memref<1x256xf32, #tpu.memory_space<vmem>>, vector<1x256xf32>
    %4 = vector.broadcast %3 : vector<1x256xf32> to vector<8x256xf32>
    %5 = arith.addf %2, %4 : vector<8x256xf32>
    %c0_5 = arith.constant 0 : index
    %c0_6 = arith.constant 0 : index
    %6 = vector.load %arg4[%c0_5, %c0_6] : memref<8x256xf32, #tpu.memory_space<vmem>>, vector<1x256xf32>
    %cst_7 = arith.constant 5.000000e-01 : f32
    %7 = vector.broadcast %cst_7 : f32 to vector<1x256xf32>
    %8 = arith.cmpf ogt, %6, %7 : vector<1x256xf32>
    %c1_i32 = arith.constant 1 : i32
    %9 = tpu.dynamic_rotate %5 by %c1_i32 dim 1 : vector<8x256xf32>, i32 -> vector<8x256xf32>
    %10 = arith.maximumf %5, %9 : vector<8x256xf32>
    %11 = vector.shape_cast %8 : vector<1x256xi1> to vector<1x256xi1>
    %12 = vector.broadcast %11 : vector<1x256xi1> to vector<8x256xi1>
    %13 = arith.select %12, %10, %5 : vector<8x256xi1>, vector<8x256xf32>
    %c1 = arith.constant 1 : index
    %c0_8 = arith.constant 0 : index
    %14 = vector.load %arg4[%c1, %c0_8] : memref<8x256xf32, #tpu.memory_space<vmem>>, vector<1x256xf32>
    %cst_9 = arith.constant 5.000000e-01 : f32
    %15 = vector.broadcast %cst_9 : f32 to vector<1x256xf32>
    %16 = arith.cmpf ogt, %14, %15 : vector<1x256xf32>
    %c255_i32 = arith.constant 255 : i32
    %17 = tpu.dynamic_rotate %13 by %c255_i32 dim 1 : vector<8x256xf32>, i32 -> vector<8x256xf32>
    %18 = arith.maximumf %13, %17 : vector<8x256xf32>
    %19 = vector.shape_cast %16 : vector<1x256xi1> to vector<1x256xi1>
    %20 = vector.broadcast %19 : vector<1x256xi1> to vector<8x256xi1>
    %21 = arith.select %20, %18, %13 : vector<8x256xi1>, vector<8x256xf32>
    %c2 = arith.constant 2 : index
    %c0_10 = arith.constant 0 : index
    %22 = vector.load %arg4[%c2, %c0_10] : memref<8x256xf32, #tpu.memory_space<vmem>>, vector<1x256xf32>
    %cst_11 = arith.constant 5.000000e-01 : f32
    %23 = vector.broadcast %cst_11 : f32 to vector<1x256xf32>
    %24 = arith.cmpf ogt, %22, %23 : vector<1x256xf32>
    %c2_i32 = arith.constant 2 : i32
    %25 = tpu.dynamic_rotate %21 by %c2_i32 dim 1 : vector<8x256xf32>, i32 -> vector<8x256xf32>
    %26 = arith.maximumf %21, %25 : vector<8x256xf32>
    %27 = vector.shape_cast %24 : vector<1x256xi1> to vector<1x256xi1>
    %28 = vector.broadcast %27 : vector<1x256xi1> to vector<8x256xi1>
    %29 = arith.select %28, %26, %21 : vector<8x256xi1>, vector<8x256xf32>
    %c3 = arith.constant 3 : index
    %c0_12 = arith.constant 0 : index
    %30 = vector.load %arg4[%c3, %c0_12] : memref<8x256xf32, #tpu.memory_space<vmem>>, vector<1x256xf32>
    %cst_13 = arith.constant 5.000000e-01 : f32
    %31 = vector.broadcast %cst_13 : f32 to vector<1x256xf32>
    %32 = arith.cmpf ogt, %30, %31 : vector<1x256xf32>
    %c254_i32 = arith.constant 254 : i32
    %33 = tpu.dynamic_rotate %29 by %c254_i32 dim 1 : vector<8x256xf32>, i32 -> vector<8x256xf32>
    %34 = arith.maximumf %29, %33 : vector<8x256xf32>
    %35 = vector.shape_cast %32 : vector<1x256xi1> to vector<1x256xi1>
    %36 = vector.broadcast %35 : vector<1x256xi1> to vector<8x256xi1>
    %37 = arith.select %36, %34, %29 : vector<8x256xi1>, vector<8x256xf32>
    %c4 = arith.constant 4 : index
    %c0_14 = arith.constant 0 : index
    %38 = vector.load %arg4[%c4, %c0_14] : memref<8x256xf32, #tpu.memory_space<vmem>>, vector<1x256xf32>
    %cst_15 = arith.constant 5.000000e-01 : f32
    %39 = vector.broadcast %cst_15 : f32 to vector<1x256xf32>
    %40 = arith.cmpf ogt, %38, %39 : vector<1x256xf32>
    %c4_i32 = arith.constant 4 : i32
    %41 = tpu.dynamic_rotate %37 by %c4_i32 dim 1 : vector<8x256xf32>, i32 -> vector<8x256xf32>
    %42 = arith.maximumf %37, %41 : vector<8x256xf32>
    %43 = vector.shape_cast %40 : vector<1x256xi1> to vector<1x256xi1>
    %44 = vector.broadcast %43 : vector<1x256xi1> to vector<8x256xi1>
    %45 = arith.select %44, %42, %37 : vector<8x256xi1>, vector<8x256xf32>
    %c5 = arith.constant 5 : index
    %c0_16 = arith.constant 0 : index
    %46 = vector.load %arg4[%c5, %c0_16] : memref<8x256xf32, #tpu.memory_space<vmem>>, vector<1x256xf32>
    %cst_17 = arith.constant 5.000000e-01 : f32
    %47 = vector.broadcast %cst_17 : f32 to vector<1x256xf32>
    %48 = arith.cmpf ogt, %46, %47 : vector<1x256xf32>
    %c252_i32 = arith.constant 252 : i32
    %49 = tpu.dynamic_rotate %45 by %c252_i32 dim 1 : vector<8x256xf32>, i32 -> vector<8x256xf32>
    %50 = arith.maximumf %45, %49 : vector<8x256xf32>
    %51 = vector.shape_cast %48 : vector<1x256xi1> to vector<1x256xi1>
    %52 = vector.broadcast %51 : vector<1x256xi1> to vector<8x256xi1>
    %53 = arith.select %52, %50, %45 : vector<8x256xi1>, vector<8x256xf32>
    %c6 = arith.constant 6 : index
    %c0_18 = arith.constant 0 : index
    %54 = vector.load %arg4[%c6, %c0_18] : memref<8x256xf32, #tpu.memory_space<vmem>>, vector<1x256xf32>
    %cst_19 = arith.constant 5.000000e-01 : f32
    %55 = vector.broadcast %cst_19 : f32 to vector<1x256xf32>
    %56 = arith.cmpf ogt, %54, %55 : vector<1x256xf32>
    %c8_i32 = arith.constant 8 : i32
    %57 = tpu.dynamic_rotate %53 by %c8_i32 dim 1 : vector<8x256xf32>, i32 -> vector<8x256xf32>
    %58 = arith.maximumf %53, %57 : vector<8x256xf32>
    %59 = vector.shape_cast %56 : vector<1x256xi1> to vector<1x256xi1>
    %60 = vector.broadcast %59 : vector<1x256xi1> to vector<8x256xi1>
    %61 = arith.select %60, %58, %53 : vector<8x256xi1>, vector<8x256xf32>
    %c7 = arith.constant 7 : index
    %c0_20 = arith.constant 0 : index
    %62 = vector.load %arg4[%c7, %c0_20] : memref<8x256xf32, #tpu.memory_space<vmem>>, vector<1x256xf32>
    %cst_21 = arith.constant 5.000000e-01 : f32
    %63 = vector.broadcast %cst_21 : f32 to vector<1x256xf32>
    %64 = arith.cmpf ogt, %62, %63 : vector<1x256xf32>
    %c248_i32 = arith.constant 248 : i32
    %65 = tpu.dynamic_rotate %61 by %c248_i32 dim 1 : vector<8x256xf32>, i32 -> vector<8x256xf32>
    %66 = arith.maximumf %61, %65 : vector<8x256xf32>
    %67 = vector.shape_cast %64 : vector<1x256xi1> to vector<1x256xi1>
    %68 = vector.broadcast %67 : vector<1x256xi1> to vector<8x256xi1>
    %69 = arith.select %68, %66, %61 : vector<8x256xi1>, vector<8x256xf32>
    %70 = arith.subf %5, %69 : vector<8x256xf32>
    %71 = math.exp %70 : vector<8x256xf32>
    %c0_22 = arith.constant 0 : index
    %c0_23 = arith.constant 0 : index
    %72 = vector.load %arg5[%c0_22, %c0_23] : memref<256x128xf32, #tpu.memory_space<vmem>>, vector<256x128xf32>
    %cst_24 = arith.constant dense<0.000000e+00> : vector<8x128xf32>
    %73 = tpu.matmul %71, %72, %cst_24 {dimension_numbers = #tpu.dot_dimension_numbers<[1], [0], [0], [1], [0, 0, 1, 1], [], []>} : vector<8x256xf32>, vector<256x128xf32>, vector<8x128xf32> -> vector<8x128xf32>
    %c0_25 = arith.constant 0 : index
    %c0_26 = arith.constant 0 : index
    %74 = vector.load %arg6[%c0_25, %c0_26] : memref<128x256xf32, #tpu.memory_space<vmem>>, vector<128x256xf32>
    %cst_27 = arith.constant dense<0.000000e+00> : vector<8x256xf32>
    %75 = tpu.matmul %73, %74, %cst_27 {dimension_numbers = #tpu.dot_dimension_numbers<[1], [0], [0], [1], [0, 0, 1, 1], [], []>} : vector<8x128xf32>, vector<128x256xf32>, vector<8x256xf32> -> vector<8x256xf32>
    %76 = tpu.reciprocal %75 : vector<8x256xf32> -> vector<8x256xf32>
    %77 = arith.mulf %71, %76 : vector<8x256xf32>
    %c0_28 = arith.constant 0 : index
    %c0_29 = arith.constant 0 : index
    %78 = vector.load %arg7[%c0_28, %c0_29] : memref<8x256xf32, #tpu.memory_space<vmem>>, vector<8x256xf32>
    tpu.vector_store %arg7[%c0_28, %c0_29], %77 {strides = array<i32>} : memref<8x256xf32, #tpu.memory_space<vmem>>, vector<8x256xf32>,
    return
  }
  func.func @transform_0(%arg0: i32) -> (i32, i32) {
    %c0_i32 = arith.constant 0 : i32
    %c0_i32_0 = arith.constant 0 : i32
    return %arg0, %c0_i32 : i32, i32
  }
  func.func @transform_1(%arg0: i32) -> (i32, i32) {
    %c0_i32 = arith.constant 0 : i32
    %c0_i32_0 = arith.constant 0 : i32
    %c0_i32_1 = arith.constant 0 : i32
    return %c0_i32, %c0_i32_0 : i32, i32
  }
  func.func @transform_2(%arg0: i32) -> (i32, i32) {
    %c0_i32 = arith.constant 0 : i32
    %c0_i32_0 = arith.constant 0 : i32
    %c0_i32_1 = arith.constant 0 : i32
    return %c0_i32, %c0_i32_0 : i32, i32
  }
  func.func @transform_3(%arg0: i32) -> (i32, i32) {
    %c0_i32 = arith.constant 0 : i32
    %c0_i32_0 = arith.constant 0 : i32
    %c0_i32_1 = arith.constant 0 : i32
    return %c0_i32, %c0_i32_0 : i32, i32
  }
  func.func @transform_4(%arg0: i32) -> (i32, i32) {
    %c0_i32 = arith.constant 0 : i32
    %c0_i32_0 = arith.constant 0 : i32
    %c0_i32_1 = arith.constant 0 : i32
    return %c0_i32, %c0_i32_0 : i32, i32
  }
  func.func @transform_5(%arg0: i32) -> (i32, i32) {
    %c0_i32 = arith.constant 0 : i32
    %c0_i32_0 = arith.constant 0 : i32
    %c0_i32_1 = arith.constant 0 : i32
    return %c0_i32, %c0_i32_0 : i32, i32
  }
  func.func @transform_6(%arg0: i32) -> (i32, i32) {
    %c0_i32 = arith.constant 0 : i32
    %c0_i32_0 = arith.constant 0 : i32
    return %arg0, %c0_i32 : i32, i32
  }
}

</mosaic_0001>

<bundles_post_ra>
// kernel: tpu_custom_call.1
= control target key start
LH: loop header
LB: loop body
LE: loop exit
PB: predicated region body
PF: predicated region fallthrough
CT: control target
= control target key end

     0   :  { %11 = vsyncpa [#allocation3], 0  ;;  %s1820_s0 = inlined_call_operand.hbm [shape: bf16[16,32], index: 0, kind: input, shape index: {}]   ;;  %s1821_s1 = inlined_call_operand.hbm [shape: bf16[32,256], index: 1, kind: input, shape index: {}]   ;;  %s1822_s2 = inlined_call_operand.vmem [shape: f32[1,256], index: 2, kind: input, shape index: {}]   ;;  %s1823_s3 = inlined_call_operand.hbm [shape: f32[8,256], index: 3, kind: input, shape index: {}]   ;;  %s1824_s4 = inlined_call_operand.hbm [shape: f32[256,128], index: 4, kind: input, shape index: {}]   ;;  %s1825_s5 = inlined_call_operand.hbm [shape: f32[128,256], index: 5, kind: input, shape index: {}]   ;;  %s1826_s6 = inlined_call_operand.hbm [shape: f32[16,256], index: 6, kind: output, shape index: {}]  }
   0x1   :  { %13 = vsyncpa [#allocation3 + $0x1], 0 }
   0x2   :  { %14 = vsyncpa [#allocation6], 0 }
   0x3   :  { %15 = vsyncpa [#allocation9], 0 }
   0x4   :  { %16 = vsyncpa [#allocation4], 0 }
   0x5   :  { %18 = vsyncpa [#allocation4 + $0x1], 0  ;;  %s1461_s21 = smov 0   ;;  %s1463_s22 = smov 0  }
   0x6   :  { %s1465_s23 = smov 0   ;;  %s1467_s24 = smov 0  }
   0x7 LB: > { %s1406_s25 = smov [#allocation5]   ;;  %s1482_s27 = sadd.s32 4294967295, %s1404_s24   ;;  %s1404_s24 = sphi %s1467_s24, %s1854_s24   ;;  %s1400_s23 = sphi %s1465_s23, %s1853_s23   ;;  %s1396_s22 = sphi %s1463_s22, %s1852_s22   ;;  %s1392_s21 = sphi %s1461_s21, %s1851_s21  }
   0x8   : > { %s198_s26 = sshll.u32 %s1406_s25, 4  ;;  %p948_p0 = scmp.ge.s32.totalorder %s1404_s24, 1  ;;  %s1487_s26 = int_to_ptr.vmem [resolvable:$true] %s198_s26 }
   0x9   : > { %p1827_p1 = scmp.eq.s32.totalorder %s1482_s27, 0  ;;  %p186_p2 = scmp.lt.s32.totalorder %s1404_s24, 3 }
   0xa   : > { %s1407_s29 = smov [#allocation8]   ;;  %s1408_s8 = smov [#allocation7]  }
   0xb   : > { %p1489_p3 = pnand %p948_p0, %p186_p2  ;;  %s225_s30 = sshll.u32 %s1407_s29, 4  ;;  %s1502_s30 = int_to_ptr.vmem [resolvable:$true] %s225_s30 }
   0xc   : > { %s215_s9 = sshll.u32 %s1408_s8, 4  ;;  %s1188_s12 = scalar_lea.hbm %s1821_s1, 512  ;;  %s1504_s9 = int_to_ptr.vmem [resolvable:$true] %s215_s9 }
   0xd   : > { %s1830_s28 = scalar_select %p1489_p3, 1, 0 }
   0xe   : > { %p1093_p5 = pneg %p1489_p3  ;;  %p1189_p7 = scmp.ne.s32.totalorder %s1821_s1, %s1188_s12 }
   0xf   : > { %p1195_p11 = scmp.lt.u32.totalorder %s1188_s12, %s1821_s1 }
  0x10   : > { %p1498_p6 = pnand %p1093_p5, %p1827_p1 }
  0x12   : > { %p1514_p8 = pneg %p1498_p6 }
  0x14   : > { %p1191_p9 = pnand %p1514_p8, %p1189_p7 }
  0x16   : > { %p1192_p10 = pneg %p1191_p9 }
  0x18   : > { %p1197_p12 = pnand %p1195_p11, %p1192_p10 }
  0x1a   : > { %1200 = shalt.err (!%p1197_p12)
}
  0x1b   : > { %s1201_s18 = scalar_lea.vmem %s1487_s26, 512  ;;  %p1209_p5 = scmp.lt.s32.totalorder %s1487_s26, %s1487_s26 }
  0x1c   : > { %p1202_p13 = scmp.ne.s32.totalorder %s1487_s26, %s1201_s18  ;;  %p1210_p4 = scmp.lt.s32.totalorder %s1201_s18, %s1201_s18 }
  0x1e   : > { %p1204_p0 = pnand %p1202_p13, %p1514_p8  ;;  %p1211_p7 = por %p1210_p4, %p1209_p5 }
  0x20   : > { %p1205_p2 = pneg %p1204_p0 }
  0x22   : > { %p1212_p9 = pnand %p1211_p7, %p1205_p2 }
  0x24   : > { %1215 = shalt.err (!%p1212_p9)
}
  0x25   : > { %s1409_s19 = smov 128   ;;  %s1410_s20 = smov 8  }
  0x26   : > { %1096 = dma.hbm_to_vmem [thread:$0]  (!%p1498_p6), %s1821_s1, 512, %s1487_s26, [#allocation6], %s1409_s19, %s1409_s19, %s1410_s20  }
  0x27   : > { %s1216_s11 = scalar_lea.hbm %s1824_s4, 4096 }
  0x28   : > { %p1217_p4 = scmp.ne.s32.totalorder %s1824_s4, %s1216_s11  ;;  %p1223_p12 = scmp.lt.u32.totalorder %s1216_s11, %s1824_s4 }
  0x2a   : > { %p1219_p10 = pnand %p1217_p4, %p1514_p8 }
  0x2c   : > { %p1220_p11 = pneg %p1219_p10 }
  0x2e   : > { %p1225_p13 = pnand %p1223_p12, %p1220_p11 }
  0x30   : > { %1228 = shalt.err (!%p1225_p13)
}
  0x31   : > { %s1229_s26 = scalar_lea.vmem %s1502_s30, 4096  ;;  %p1237_p7 = scmp.lt.s32.totalorder %s1502_s30, %s1502_s30 }
  0x32   : > { %p1230_p0 = scmp.ne.s32.totalorder %s1502_s30, %s1229_s26  ;;  %p1238_p9 = scmp.lt.s32.totalorder %s1229_s26, %s1229_s26 }
  0x34   : > { %p1232_p2 = pnand %p1230_p0, %p1514_p8  ;;  %p1239_p4 = por %p1238_p9, %p1237_p7 }
  0x36   : > { %p1233_p5 = pneg %p1232_p2 }
  0x38   : > { %p1240_p10 = pnand %p1239_p4, %p1233_p5 }
  0x3a   : > { %1243 = shalt.err (!%p1240_p10)
}
  0x3b   : > { %1102 = dma.hbm_to_vmem [thread:$0]  (!%p1498_p6), %s1824_s4, 4096, %s1502_s30, [#allocation9], %s1409_s19, %s1409_s19, %s1410_s20  }
  0x3c   : > { %s1244_s8 = scalar_lea.hbm %s1823_s3, 256 }
  0x3d   : > { %p1245_p11 = scmp.ne.s32.totalorder %s1823_s3, %s1244_s8  ;;  %p1251_p0 = scmp.lt.u32.totalorder %s1244_s8, %s1823_s3 }
  0x3f   : > { %p1247_p12 = pnand %p1245_p11, %p1514_p8 }
  0x41   : > { %p1248_p13 = pneg %p1247_p12 }
  0x43   : > { %p1253_p2 = pnand %p1251_p0, %p1248_p13 }
  0x45   : > { %1256 = shalt.err (!%p1253_p2)
}
  0x46   : > { %s1257_s30 = scalar_lea.vmem %s1504_s9, 256  ;;  %p1265_p4 = scmp.lt.s32.totalorder %s1504_s9, %s1504_s9 }
  0x47   : > { %p1258_p5 = scmp.ne.s32.totalorder %s1504_s9, %s1257_s30  ;;  %p1266_p10 = scmp.lt.s32.totalorder %s1257_s30, %s1257_s30 }
  0x49   : > { %p1260_p7 = pnand %p1258_p5, %p1514_p8  ;;  %p1267_p11 = por %p1266_p10, %p1265_p4 }
  0x4b   : > { %p1261_p9 = pneg %p1260_p7 }
  0x4d   : > { %p1268_p12 = pnand %p1267_p11, %p1261_p9 }
  0x4f   : > { %1271 = shalt.err (!%p1268_p12)
}
  0x50   : > { %1099 = dma.hbm_to_vmem [thread:$0]  (!%p1498_p6), %s1823_s3, 256, %s1504_s9, [#allocation6]  }
  0x51   : > { %s1411_s14 = smov [#allocation10]   ;;  %s1272_s18 = scalar_lea.hbm %s1825_s5, 4096 }
  0x52   : > { %s238_s16 = sshll.u32 %s1411_s14, 4  ;;  %p1273_p13 = scmp.ne.s32.totalorder %s1825_s5, %s1272_s18  ;;  %s239_s16 = int_to_ptr.vmem [resolvable:$true] %s238_s16 }
  0x53   : > { %p1279_p5 = scmp.lt.u32.totalorder %s1272_s18, %s1825_s5 }
  0x54   : > { %p1275_p0 = pnand %p1273_p13, %p1514_p8 }
  0x56   : > { %p1276_p2 = pneg %p1275_p0 }
  0x58   : > { %p1281_p7 = pnand %p1279_p5, %p1276_p2 }
  0x5a   : > { %1284 = shalt.err (!%p1281_p7)
}
  0x5b   : > { %s1285_s9 = scalar_lea.vmem %s239_s16, 4096  ;;  %p1293_p11 = scmp.lt.s32.totalorder %s239_s16, %s239_s16 }
  0x5c   : > { %p1286_p9 = scmp.ne.s32.totalorder %s239_s16, %s1285_s9  ;;  %p1294_p12 = scmp.lt.s32.totalorder %s1285_s9, %s1285_s9 }
  0x5e   : > { %p1288_p4 = pnand %p1286_p9, %p1514_p8  ;;  %p1295_p1 = por %p1294_p12, %p1293_p11 }
  0x60   : > { %p1289_p10 = pneg %p1288_p4 }
  0x62   : > { %p1296_p3 = pnand %p1295_p1, %p1289_p10 }
  0x64   : > { %1299 = shalt.err (!%p1296_p3)
}
  0x65   : > { %s1412_s11 = smov 256   ;;  %s1413_s15 = smov 16  }
  0x66   : > { %1105 = dma.hbm_to_vmem [thread:$0]  (!%p1498_p6), %s1825_s5, 4096, %s239_s16, [#allocation9], %s1412_s11, %s1412_s11, %s1413_s15  }
  0x67   : > { %s947_s30 = sadd.s32 4294967294, %s1404_s24   ;;  %s1601_s19 = sadd.s32 1, %s1404_s24  }
  0x68   : > { %s28_s20 = ssub.s32 %s1404_s24, %s1601_s19  ;;  %s31_s14 = sadd.s32 1, %s1400_s23 }
  0x69   : > { %p29_p1 = scmp.eq.s32.totalorder %s28_s20, 0  ;;  %p38_p3 = scmp.ne.s32.totalorder %s1400_s23, %s1396_s22 }
  0x6a   : > { %p39_p8 = scmp.eq.s32.totalorder %s1404_s24, 0  ;;  %p44_p13 = scmp.ne.s32.totalorder %s1396_s22, %s1392_s21 }
  0x6b   : > { %s1612_s26 = scalar_select %p29_p1, %s1400_s23, %s31_s14  }
  0x6c   : > { %p1614_p0 = por %p39_p8, %p38_p3  ;;  %p1834_p2 = scmp.eq.s32.totalorder %s1482_s27, 0 }
  0x6d   : > { %p173_p5 = scmp.eq.s32.totalorder %s1482_s27, 1  ;;  %p179_p7 = scmp.eq.s32.totalorder %s947_s30, 1 }
  0x6e   : > { %p1620_p6 = por %p1834_p2, %p44_p13  ;;  %p1118_p9 = scmp.lt.s32.totalorder %s1404_s24, 2 }
  0x6f   : > { %s252_s17 = sand.u32 1, %s1400_s23   ;;  %p1627_p4 = por %p173_p5, %p38_p3 }
  0x70   : > { %p1631_p10 = por %p179_p7, %p44_p13  ;;  %s954_s29 = sshll.u32 %s252_s17, 2 }
  0x71   : > { %s1836_s18 = scalar_select %p1627_p4, 1, 0 }
  0x72   : > { %s1837_s25 = scalar_select %p1631_p10, 1, 0 }
  0x73   : > { %s955_s8 = sshll.u32 %s1404_s24, 6  ;;  %s256_s15 = scalar_lea.vmem [#allocation2], %s954_s29 }
  0x74   : > { %s1639_s11 = scalar_lea.hbm %s1820_s0, %s955_s8  ;;  %s263_s12 = sshll.u32 %s256_s15, 4  ;;  %s1641_s12 = int_to_ptr.vmem [resolvable:$true] %s263_s12 }
  0x75   : > { %p1645_p11 = pnand %p1118_p9, %p1614_p0  ;;  %s253_s30 = scalar_lea.sflag [#allocation3], %s252_s17 }
  0x76   : > { %s1300_s20 = scalar_lea.hbm %s1639_s11, 64  ;;  %s1305_s8 = scalar_lea.hbm %s1820_s0, 128 }
  0x77   : > { %p1301_p12 = scmp.ne.s32.totalorder %s1639_s11, %s1300_s20  ;;  %p1302_p1 = pneg %p1645_p11 }
  0x78   : > { %p1306_p13 = scmp.lt.u32.totalorder %s1639_s11, %s1820_s0  ;;  %p1307_p0 = scmp.lt.u32.totalorder %s1305_s8, %s1300_s20 }
  0x79   : > { %p1303_p3 = pnand %p1302_p1, %p1301_p12  ;;  %p1309_p5 = scmp.lt.u32.totalorder %s1300_s20, %s1639_s11 }
  0x7a   : > { %p1308_p2 = por %p1307_p0, %p1306_p13 }
  0x7b   : > { %p1304_p8 = pneg %p1303_p3 }
  0x7c   : > { %p1310_p7 = por %p1309_p5, %p1308_p2 }
  0x7e   : > { %p1311_p9 = pnand %p1310_p7, %p1304_p8 }
  0x80   : > { %1314 = shalt.err (!%p1311_p9)
}
  0x81   : > { %s1315_s17 = scalar_lea.vmem %s1641_s12, 64  ;;  %s1414_s9 = smov [#allocation2]  }
  0x82   : > { %p1316_p12 = scmp.ne.s32.totalorder %s1641_s12, %s1315_s17  ;;  %s1320_s15 = sshll.u32 %s1414_s9, 4  ;;  %s1321_s15 = int_to_ptr.vmem [resolvable:$false] %s1320_s15 }
  0x83   : > { %s1322_s14 = scalar_lea.vmem %s1321_s15, 128  ;;  %p1323_p4 = scmp.lt.s32.totalorder %s1641_s12, %s1321_s15 }
  0x84   : > { %p1318_p3 = pnand %p1316_p12, %p1302_p1  ;;  %p1324_p13 = scmp.lt.s32.totalorder %s1322_s14, %s1315_s17 }
  0x86   : > { %p1319_p10 = pneg %p1318_p3  ;;  %p1325_p0 = por %p1324_p13, %p1323_p4 }
  0x88   : > { %p1326_p2 = pnand %p1325_p0, %p1319_p10 }
  0x8a   : > { %1329 = shalt.err (!%p1326_p2)
}
  0x8b   : > { %1109 = dma.hbm_to_vmem [thread:$0]  (!%p1645_p11), %s1639_s11, 64, %s1641_s12, %s253_s30  }
  0x8c   : > { %p1839_p8 = scmp.ne.s32.totalorder %s1830_s28, 0 }
  0x8d   : > { %s1677_s20 = sand.u32 (!%p1839_p8), 1, %s1396_s22  }
  0x8e   : > { %272 = sbr.rel (%p1839_p8) target bundleno = 1811 (0x713), region = 44  ;;  %s957_s29 = sshll.u32 (!%p1839_p8), %s1677_s20, 2 }
  0x8f   : > { %s275_s8 = scalar_lea.sflag (!%p1839_p8), [#allocation3], %s1677_s20  ;;  %s278_s7 = scalar_lea.vmem (!%p1839_p8), [#allocation2], %s957_s29 }
  0x95   : > { %1375 = dma.done.wait (%p1620_p6), %s275_s8, 64  }
  0x96   : > { %1377 = vsyncadd (%p1620_p6), %s275_s8, 4294967232  ;;  %p1840_p4 = scmp.eq.s32.totalorder %s1482_s27, 0 }
  0x98   : > { %1379 = dma.done.wait (%p1840_p4), [#allocation6], 768   ;;  %p1841_p10 = pmov %p1840_p4 }
  0x99   : > { %p1842_p11 = pmov %p1840_p4 }
  0x9a   : > { %1381 = vsyncadd (%p1841_p10), [#allocation6], 4294966528 }
  0x9b   : > { %1383 = dma.done.wait (%p1842_p11), [#allocation9], 8192   ;;  %p1843_p1 = pmov %p1840_p4 }
  0x9c   : > { %v1415_v0 = vmov 0   ;;  %v1174_v1 = vld [vmem:[#allocation5 + $0x4] ss:$8 sps:$4 sm:$0xff]   ;;  %v1176_v2 = vld [vmem:[#allocation5] ss:$8 sps:$4 sm:$0xff]   ;;  %vm361_vm0 = vcmask 261120   ;;  %v331_v6 = vlaneseq }
  0x9d   : > { %1385 = vsyncadd (%p1843_p1), [#allocation9], 4294959104  ;;  %397 = vmatprep.mubr.bf16.mxu0 %v1415_v0  ;;  %365 = vmatprep.subr.bf16.mxu0 %v1174_v1  ;;  %v1177_v3 = vld [vmem:[#allocation5 + $0x14] ss:$8 sps:$4 sm:$0xff]   ;;  %v1179_v4 = vld [vmem:[#allocation5 + $0x10] ss:$8 sps:$4 sm:$0xff]  }
  0x9e   : > { %366 = vmatpush1.bf16.msra.mxu0 %v1176_v2  ;;  %v324_v5 = vld [vmem:[%s278_s7] sm:$0xf]  ;;  %v332_v7 = vshrl.u32 %v331_v6, 7  ;;  %s1416_s11 = smov 1   ;;  %v1709_v20 = vand.u32 127, %v331_v6  ;;  %s1417_s12 = smov 127  }
  0x9f   : > { %367 = vmatprep.subr.bf16.mxu0 %v1177_v3  ;;  %v329_v9 = vld [vmem:[%s1822_s2] sm:$0x3]  ;;  %v406_v19 = vld [vmem:[#allocation7] ss:$8 sm:$0x3]  ;;  %s1418_s13 = smov 2  }
  0xa0   : > { %v1694_v8 = vsub.s32 0, %v332_v7  ;;  %v1700_v11 = vsub.s32 1, %v332_v7  ;;  %vm407_vm1 = vcmp.gt.f32.partialorder %v406_v19, 0.5  ;;  %vm414_vm2 = vcmp.lt.s32.totalorder %v1709_v20, 1  ;;  %s1419_s30 = smov 126   ;;  %s1420_s10 = smov 4  }
  0xa1   : > { %v419_v21 = vsel %vm407_vm1, 1, %v1415_v0  ;;  %v433_v32 = vld [vmem:[#allocation7 + $0x1] ss:$8 sm:$0x3]  ;;  %vm439_vm6 = vcmp.lt.s32.totalorder %v1709_v20, 127  ;;  %vm464_vm10 = vcmp.lt.s32.totalorder %v1709_v20, 2 }
  0xa2   : > { %368 = vmatpush1.bf16.msra.mxu0 %v1179_v4  ;;  %v334_v10 = vrot.slane %v329_v9, %v1694_v8  ;;  %v338_v14 = vrot.slane %v329_v9, %v1700_v11  ;;  %v423_v23 = vrot.slane %v419_v21, %v1694_v8  ;;  %v427_v27 = vrot.slane %v419_v21, %v1700_v11  ;;  %v458_v44 = vld [vmem:[#allocation7 + $0x2] ss:$8 sm:$0x3]  ;;  %v483_v56 = vld [vmem:[#allocation7 + $0x3] ss:$8 sm:$0x3] }
  0xa3   : > { %vm434_vm5 = vcmp.gt.f32.partialorder %v433_v32, 0.5  ;;  %vm459_vm9 = vcmp.gt.f32.partialorder %v458_v44, 0.5  ;;  %vm484_vm13 = vcmp.gt.f32.partialorder %v483_v56, 0.5  ;;  %vm489_vm14 = vcmp.lt.s32.totalorder %v1709_v20, 126  ;;  %s1421_s17 = smov 124   ;;  %v632_v32 = vld [vmem:[#allocation8 + $0x98] sm:$0xff] }
  0xa4   : > { %vm428_vm3 = vcmp.eq.s32.totalorder %v423_v23, 1  ;;  %vm429_vm4 = vcmp.eq.s32.totalorder %v427_v27, 1  ;;  %v444_v33 = vsel %vm434_vm5, 1, %v1415_v0  ;;  %v469_v45 = vsel %vm459_vm9, 1, %v1415_v0  ;;  %v617_v44 = vld [vmem:[#allocation8 + $0x20] sm:$0xff]  ;;  %s1422_s9 = smov 8  }
  0xa5   : > { %967 = vmatmul.mubr.msk.bf16.vlgmr.msra.gmra.mrb[0].mxu0 %vm361_vm0, %v324_v5  ;;  %v452_v35 = vrot.slane %v444_v33, %v1700_v11  ;;  %v448_v36 = vrot.slane %v444_v33, %v1694_v8  ;;  %v473_v46 = vrot.slane %v469_v45, %v1694_v8  ;;  %v477_v47 = vrot.slane %v469_v45, %v1700_v11  ;;  %v508_v5 = vld [vmem:[#allocation7 + $0x4] ss:$8 sm:$0x3]  ;;  %v618_v45 = vld [vmem:[#allocation8 + $0x28] sm:$0xff]  ;;  %s1423_s15 = smov 120   ;;  %s962_s14 = sshll.u32 %s1677_s20, 4 }
  0xa6   : > { %v494_v57 = vsel %vm484_vm13, 1, %v1415_v0  ;;  %vm509_vm1 = vcmp.gt.f32.partialorder %v508_v5, 0.5  ;;  %v619_v56 = vld [vmem:[#allocation8 + $0x30] sm:$0xff]  ;;  %s973_s29 = sshll.u32 %s1482_s27, 8  ;;  %s322_s8 = scalar_lea.vmem [#allocation11], %s962_s14 }
  0xa7   : > { %vm454_vm7 = vcmp.eq.s32.totalorder %v452_v35, 1  ;;  %vm453_vm8 = vcmp.eq.s32.totalorder %v448_v36, 1  ;;  %vm478_vm11 = vcmp.eq.s32.totalorder %v473_v46, 1  ;;  %vm479_vm12 = vcmp.eq.s32.totalorder %v477_v47, 1  ;;  %v615_v35 = vld [vmem:[#allocation8 + $0x10] sm:$0xff]  ;;  %v616_v36 = vld [vmem:[#allocation8 + $0x18] sm:$0xff] }
  0xa8   : > { %v502_v58 = vrot.slane %v494_v57, %v1700_v11  ;;  %v498_v59 = vrot.slane %v494_v57, %v1694_v8  ;;  %v519_v6 = vsel %vm509_vm1, 1, %v1415_v0  ;;  %v620_v57 = vld [vmem:[#allocation8 + $0x38] sm:$0xff]  ;;  %v639_v5 = vld [vmem:[#allocation8 + $0xd0] sm:$0xff]  ;;  %s839_s7 = sshll.u32 %s322_s8, 4  ;;  %p1848_p5 = scmp.ne.s32.totalorder %s1836_s18, 0  ;;  %s1778_s7 = int_to_ptr.vmem [resolvable:$true] %s839_s7 }
  0xa9   : > { %v523_v7 = vrot.slane %v519_v6, %v1694_v8  ;;  %v527_v9 = vrot.slane %v519_v6, %v1700_v11  ;;  %v640_v6 = vld [vmem:[#allocation8 + $0xd8] sm:$0xff]  ;;  %s1330_s27 = scalar_lea.vmem %s1778_s7, 256 }
  0xaa   : > { %vm504_vm15 = vcmp.eq.s32.totalorder %v502_v58, 1  ;;  %vm503_vm0 = vcmp.eq.s32.totalorder %v498_v59, 1  ;;  %v1023_v58 = vpack.c.bf16 %v620_v57, %v619_v56  ;;  %v730_v56 = vld [vmem:[#allocation10 + $0x78] sm:$0xff]  ;;  %p1331_p6 = scmp.ne.s32.totalorder %s1778_s7, %s1330_s27 }
  0xac   : > { %p1332_p7 = pnand %p1331_p6, %p1848_p5 }
  0xae   : > { %p1333_p9 = pneg %p1332_p7 }
 0x178   : > { %v399_v12 = vpop.f32.mrb[0].mxu0 }
 0x179   : > { %v1702_v13 = vadd.f32 %v399_v12, %v334_v10  ;;  %v401_v15 = vpop.f32.mrb[1].mxu0 }
 0x17a   : > { %v403_v16 = vpop.f32.mrb[2].mxu0  ;;  %v1706_v18 = vadd.f32 %v401_v15, %v338_v14 }
 0x17b   : > { %v404_v17 = vpop.f32.mrb[3].mxu0  ;;  %408 = vrot.lane.b32.xlu0 %v1702_v13, %s1416_s11 }
 0x17f   : > { %410 = vrot.lane.b32.xlu0 %v1706_v18, %s1416_s11  ;;  %s1776_s11 = scalar_lea.hbm %s1826_s6, %s973_s29 }
 0x1ed   : > { %v409_v22 = vpop.permute.xlu0 %408 }
 0x1f1   : > { %v411_v24 = vpop.permute.xlu0 %410 }
 0x1f2   : > { %v415_v25 = vsel %vm414_vm2, %v409_v22, %v411_v24  ;;  %v416_v26 = vsel %vm414_vm2, %v411_v24, %v409_v22  ;;  %vm514_vm2 = vcmp.lt.s32.totalorder %v1709_v20, 4  ;;  %v533_v22 = vld [vmem:[#allocation7 + $0x5] ss:$8 sm:$0x3]  ;;  %v629_v24 = vld [vmem:[#allocation8 + $0x80] sm:$0xff] }
 0x1f3   : > { %v417_v28 = vmax.f32 %v1702_v13, %v416_v26  ;;  %v418_v29 = vmax.f32 %v1706_v18, %v415_v25  ;;  %vm534_vm5 = vcmp.gt.f32.partialorder %v533_v22, 0.5  ;;  %v630_v25 = vld [vmem:[#allocation8 + $0x88] sm:$0xff]  ;;  %v613_v26 = vld [vmem:[#allocation8] sm:$0xff] }
 0x1f4   : > { %v544_v23 = vsel %vm534_vm5, 1, %v1415_v0  ;;  %v641_v22 = vld [vmem:[#allocation8 + $0xe0] sm:$0xff] }
 0x1f5   : > { %v430_v30 = vsel %vm428_vm3, %v417_v28, %v1702_v13  ;;  %v431_v31 = vsel %vm429_vm4, %v418_v29, %v1706_v18  ;;  %vm528_vm3 = vcmp.eq.s32.totalorder %v523_v7, 1  ;;  %vm529_vm4 = vcmp.eq.s32.totalorder %v527_v9, 1  ;;  %v623_v9 = vld [vmem:[#allocation8 + $0x50] sm:$0xff] }
 0x1f6   : > { %435 = vrot.lane.b32.xlu1 %v430_v30, %s1417_s12  ;;  %v552_v27 = vrot.slane %v544_v23, %v1700_v11  ;;  %v548_v28 = vrot.slane %v544_v23, %v1694_v8  ;;  %v1009_v29 = vpack.c.bf16 %v630_v25, %v629_v24  ;;  %v1029_v7 = vpack.c.bf16 %v640_v6, %v639_v5  ;;  %v642_v23 = vld [vmem:[#allocation8 + $0xe8] sm:$0xff]  ;;  %v625_v24 = vld [vmem:[#allocation8 + $0x60] sm:$0xff]  ;;  %v738_v5 = vld [vmem:[#allocation10 + $0xb8] sm:$0xff] }
 0x1f8   : > { %1010 = vmatprep.subr.bf16.mxu1 %v1009_v29  ;;  %v643_v29 = vld [vmem:[#allocation8 + $0xf0] sm:$0xff] }
 0x1fa   : > { %437 = vrot.lane.b32.xlu1 %v431_v31, %s1417_s12  ;;  %s825_s12 = scalar_lea.sflag [#allocation4], %s1677_s20 }
 0x268   : > { %v436_v34 = vpop.permute.xlu1 %435 }
 0x26c   : > { %v438_v37 = vpop.permute.xlu1 %437 }
 0x26d   : > { %v440_v38 = vsel %vm439_vm6, %v436_v34, %v438_v37  ;;  %v441_v39 = vsel %vm439_vm6, %v438_v37, %v436_v34  ;;  %vm539_vm6 = vcmp.lt.s32.totalorder %v1709_v20, 124  ;;  %v633_v37 = vld [vmem:[#allocation8 + $0xa0] sm:$0xff] }
 0x26e   : > { %v442_v40 = vmax.f32 %v430_v30, %v440_v38  ;;  %v443_v41 = vmax.f32 %v431_v31, %v441_v39  ;;  %v634_v38 = vld [vmem:[#allocation8 + $0xa8] sm:$0xff] }
 0x270   : > { %v456_v42 = vsel %vm454_vm7, %v443_v41, %v431_v31  ;;  %v455_v43 = vsel %vm453_vm8, %v442_v40, %v430_v30  ;;  %v614_v30 = vld [vmem:[#allocation8 + $0x8] sm:$0xff]  ;;  %v631_v31 = vld [vmem:[#allocation8 + $0x90] sm:$0xff]  ;;  %v1015_v41 = vpack.c.bf16 %v616_v36, %v615_v35  ;;  %vm554_vm7 = vcmp.eq.s32.totalorder %v552_v27, 1 }
 0x271   : > { %462 = vrot.lane.b32.xlu1 %v456_v42, %s1418_s13  ;;  %460 = vrot.lane.b32.xlu0 %v455_v43, %s1418_s13  ;;  %v1011_v33 = vpack.c.bf16 %v614_v30, %v613_v26  ;;  %v1013_v34 = vpack.c.bf16 %v632_v32, %v631_v31  ;;  %vm553_vm8 = vcmp.eq.s32.totalorder %v548_v28, 1  ;;  %v1033_v27 = vpack.c.bf16 %v642_v23, %v641_v22  ;;  %v626_v28 = vld [vmem:[#allocation8 + $0x68] sm:$0xff]  ;;  %v644_v30 = vld [vmem:[#allocation8 + $0xf8] sm:$0xff]  ;;  %s1425_s13 = smov [#allocation11]  }
 0x272   : > { %v1035_v31 = vpack.c.bf16 %v626_v28, %v625_v24  ;;  %v1037_v32 = vpack.c.bf16 %v644_v30, %v643_v29  ;;  %v583_v22 = vld [vmem:[#allocation7 + $0x7] ss:$8 sm:$0x3] }
 0x273   : > { %1012 = vmatpush3.bf16.msra.mxu1 %v1011_v33  ;;  %v627_v33 = vld [vmem:[#allocation8 + $0x70] sm:$0xff]  ;;  %vm584_vm13 = vcmp.gt.f32.partialorder %v583_v22, 0.5 }
 0x274   : > { %1014 = vmatprep.subr.bf16.mxu1 %v1013_v34  ;;  %v628_v34 = vld [vmem:[#allocation8 + $0x78] sm:$0xff]  ;;  %v594_v23 = vsel %vm584_vm13, 1, %v1415_v0 }
 0x275   : > { %v598_v24 = vrot.slane %v594_v23, %v1694_v8 }
 0x277   : > { %1016 = vmatpush3.bf16.msra.mxu1 %v1015_v41 }
 0x2e3   : > { %v463_v48 = vpop.permute.xlu1 %462  ;;  %v461_v49 = vpop.permute.xlu0 %460 }
 0x2e4   : > { %v465_v50 = vsel %vm464_vm10, %v461_v49, %v463_v48  ;;  %v466_v51 = vsel %vm464_vm10, %v463_v48, %v461_v49  ;;  %v1017_v48 = vpack.c.bf16 %v634_v38, %v633_v37  ;;  %vm564_vm10 = vcmp.lt.s32.totalorder %v1709_v20, 8  ;;  %v716_v38 = vld [vmem:[#allocation10 + $0x8] sm:$0xff] }
 0x2e5   : > { %v467_v52 = vmax.f32 %v455_v43, %v466_v51  ;;  %v468_v53 = vmax.f32 %v456_v42, %v465_v50  ;;  %v1019_v51 = vpack.c.bf16 %v618_v45, %v617_v44  ;;  %v1039_v37 = vpack.c.bf16 %v628_v34, %v627_v33  ;;  %v722_v44 = vld [vmem:[#allocation10 + $0x38] sm:$0xff] }
 0x2e6   : > { %1018 = vmatprep.subr.bf16.mxu1 %v1017_v48  ;;  %v721_v48 = vld [vmem:[#allocation10 + $0x30] sm:$0xff] }
 0x2e7   : > { %v480_v54 = vsel %vm478_vm11, %v467_v52, %v455_v43  ;;  %v481_v55 = vsel %vm479_vm12, %v468_v53, %v456_v42  ;;  %1020 = vmatpush3.bf16.msra.mxu1 %v1019_v51  ;;  %v558_v52 = vld [vmem:[#allocation7 + $0x6] ss:$8 sm:$0x3] }
 0x2e8   : > { %485 = vrot.lane.b32.xlu0 %v480_v54, %s1419_s30  ;;  %487 = vrot.lane.b32.xlu1 %v481_v55, %s1419_s30  ;;  %v635_v53 = vld [vmem:[#allocation8 + $0xb0] sm:$0xff]  ;;  %vm559_vm9 = vcmp.gt.f32.partialorder %v558_v52, 0.5  ;;  %s1334_s30 = sshll.u32 %s1425_s13, 4  ;;  %s1335_s30 = int_to_ptr.vmem [resolvable:$false] %s1334_s30 }
 0x2e9   : > { %v569_v59 = vsel %vm559_vm9, 1, %v1415_v0  ;;  %p1337_p12 = scmp.lt.s32.totalorder %s1778_s7, %s1335_s30 }
 0x35a   : > { %v486_v60 = vpop.permute.xlu0 %485  ;;  %v488_v61 = vpop.permute.xlu1 %487 }
 0x35b   : > { %v490_v62 = vsel %vm489_vm14, %v486_v60, %v488_v61  ;;  %v491_v63 = vsel %vm489_vm14, %v488_v61, %v486_v60  ;;  %v637_v60 = vld [vmem:[#allocation8 + $0xc0] sm:$0xff]  ;;  %v638_v61 = vld [vmem:[#allocation8 + $0xc8] sm:$0xff]  ;;  %vm589_vm14 = vcmp.lt.s32.totalorder %v1709_v20, 120 }
 0x35c   : > { %v492_v1 = vmax.f32 %v480_v54, %v490_v62  ;;  %v493_v2 = vmax.f32 %v481_v55, %v491_v63  ;;  %v1025_v62 = vpack.c.bf16 %v638_v61, %v637_v60  ;;  %v621_v63 = vld [vmem:[#allocation8 + $0x40] sm:$0xff]  ;;  %v729_v60 = vld [vmem:[#allocation10 + $0x70] sm:$0xff]  ;;  %v732_v61 = vld [vmem:[#allocation10 + $0x88] sm:$0xff] }
 0x35e   : > { %v506_v3 = vsel %vm504_vm15, %v493_v2, %v481_v55  ;;  %v505_v4 = vsel %vm503_vm0, %v492_v1, %v480_v54  ;;  %v636_v54 = vld [vmem:[#allocation8 + $0xb8] sm:$0xff]  ;;  %v622_v1 = vld [vmem:[#allocation8 + $0x48] sm:$0xff]  ;;  %vm603_vm15 = vcmp.eq.s32.totalorder %v598_v24, 1 }
 0x35f   : > { %512 = vrot.lane.b32.xlu1 %v506_v3, %s1420_s10  ;;  %510 = vrot.lane.b32.xlu0 %v505_v4, %s1420_s10  ;;  %v1021_v55 = vpack.c.bf16 %v636_v54, %v635_v53  ;;  %v1027_v2 = vpack.c.bf16 %v622_v1, %v621_v63  ;;  %v723_v53 = vld [vmem:[#allocation10 + $0x40] sm:$0xff]  ;;  %v725_v54 = vld [vmem:[#allocation10 + $0x50] sm:$0xff]  ;;  %s1336_s10 = scalar_lea.vmem %s1335_s30, 512 }
 0x360   : > { %v1051_v57 = vpack.c.bf16 %v725_v54, %v723_v53  ;;  %p1338_p3 = scmp.lt.s32.totalorder %s1336_s10, %s1330_s27 }
 0x361   : > { %1022 = vmatprep.subr.bf16.mxu1 %v1021_v55  ;;  %v728_v55 = vld [vmem:[#allocation10 + $0x68] sm:$0xff] }
 0x362   : > { %1024 = vmatpush3.bf16.msra.mxu1 %v1023_v58  ;;  %v1053_v58 = vpack.c.bf16 %v730_v56, %v728_v55  ;;  %p1339_p13 = por %p1338_p3, %p1337_p12 }
 0x363   : > { %1026 = vmatprep.subr.bf16.mxu1 %v1025_v62  ;;  %v734_v62 = vld [vmem:[#allocation10 + $0x98] sm:$0xff] }
 0x364   : > { %v1057_v1 = vpack.c.bf16 %v734_v62, %v732_v61  ;;  %p1340_p0 = pnand %p1339_p13, %p1333_p9 }
 0x366   : > { %1028 = vmatpush3.bf16.msra.mxu1 %v1027_v2  ;;  %v731_v2 = vld [vmem:[#allocation10 + $0x80] sm:$0xff] }
 0x367   : > { %1030 = vmatprep.subr.bf16.mxu1 %v1029_v7 }
 0x3d1   : > { %v513_v10 = vpop.permute.xlu1 %512  ;;  %v511_v12 = vpop.permute.xlu0 %510 }
 0x3d2   : > { %v515_v14 = vsel %vm514_vm2, %v511_v12, %v513_v10  ;;  %v516_v15 = vsel %vm514_vm2, %v513_v10, %v511_v12  ;;  %v624_v10 = vld [vmem:[#allocation8 + $0x58] sm:$0xff] }
 0x3d3   : > { %v517_v16 = vmax.f32 %v505_v4, %v516_v15  ;;  %v518_v17 = vmax.f32 %v506_v3, %v515_v14  ;;  %v1031_v15 = vpack.c.bf16 %v624_v10, %v623_v9  ;;  %v735_v9 = vld [vmem:[#allocation10 + $0xa0] sm:$0xff]  ;;  %v737_v10 = vld [vmem:[#allocation10 + $0xb0] sm:$0xff] }
 0x3d5   : > { %v530_v19 = vsel %vm528_vm3, %v517_v16, %v505_v4  ;;  %v531_v21 = vsel %vm529_vm4, %v518_v17, %v506_v3  ;;  %v573_v3 = vrot.slane %v569_v59, %v1694_v8  ;;  %v577_v4 = vrot.slane %v569_v59, %v1700_v11  ;;  %1032 = vmatpush3.bf16.msra.mxu1 %v1031_v15  ;;  %v727_v59 = vld [vmem:[#allocation10 + $0x60] sm:$0xff] }
 0x3d6   : > { %535 = vrot.lane.b32.xlu0 %v530_v19, %s1421_s17  ;;  %537 = vrot.lane.b32.xlu1 %v531_v21, %s1421_s17  ;;  %v1055_v63 = vpack.c.bf16 %v729_v60, %v727_v59  ;;  %v1063_v15 = vpack.c.bf16 %v737_v10, %v735_v9 }
 0x3d7   : > { %vm1743_vm11 = vcmp.eq.s32.totalorder %v573_v3, 1  ;;  %vm1747_vm12 = vcmp.eq.s32.totalorder %v577_v4, 1  ;;  %1034 = vmatprep.subr.bf16.mxu1 %v1033_v27  ;;  %v733_v3 = vld [vmem:[#allocation10 + $0x90] sm:$0xff]  ;;  %v736_v4 = vld [vmem:[#allocation10 + $0xa8] sm:$0xff] }
 0x3d8   : > { %v1059_v6 = vpack.c.bf16 %v733_v3, %v731_v2  ;;  %v1061_v7 = vpack.c.bf16 %v738_v5, %v736_v4 }
 0x3d9   : > { %1036 = vmatpush3.bf16.msra.mxu1 %v1035_v31 }
 0x3da   : > { %1038 = vmatprep.subr.bf16.mxu1 %v1037_v32 }
 0x3dd   : > { %1040 = vmatpush3.bf16.msra.mxu1 %v1039_v37 }
 0x448   : > { %v536_v39 = vpop.permute.xlu0 %535  ;;  %v538_v40 = vpop.permute.xlu1 %537 }
 0x449   : > { %v540_v42 = vsel %vm539_vm6, %v536_v39, %v538_v40  ;;  %v541_v43 = vsel %vm539_vm6, %v538_v40, %v536_v39  ;;  %v718_v39 = vld [vmem:[#allocation10 + $0x18] sm:$0xff]  ;;  %v715_v40 = vld [vmem:[#allocation10] sm:$0xff] }
 0x44a   : > { %v542_v46 = vmax.f32 %v530_v19, %v540_v42  ;;  %v543_v47 = vmax.f32 %v531_v21, %v541_v43  ;;  %v1041_v41 = vpack.c.bf16 %v718_v39, %v716_v38  ;;  %v717_v42 = vld [vmem:[#allocation10 + $0x10] sm:$0xff]  ;;  %v720_v43 = vld [vmem:[#allocation10 + $0x28] sm:$0xff]  ;;  %v746_v39 = vld [vmem:[#allocation10 + $0xf8] sm:$0xff] }
 0x44b   : > { %v1043_v45 = vpack.c.bf16 %v717_v42, %v715_v40  ;;  %v744_v38 = vld [vmem:[#allocation10 + $0xe8] sm:$0xff] }
 0x44c   : > { %v556_v49 = vsel %vm554_vm7, %v543_v47, %v531_v21  ;;  %v555_v50 = vsel %vm553_vm8, %v542_v46, %v530_v19  ;;  %v1045_v46 = vpack.c.bf16 %v722_v44, %v720_v43  ;;  %v719_v47 = vld [vmem:[#allocation10 + $0x20] sm:$0xff]  ;;  %1042 = vmatprep.subr.bf16.mxu0 %v1041_v41  ;;  %v741_v19 = vld [vmem:[#allocation10 + $0xd0] sm:$0xff]  ;;  %v1069_v40 = vpack.c.bf16 %v746_v39, %v744_v38 }
 0x44d   : > { %562 = vrot.lane.b32.xlu1 %v556_v49, %s1422_s9  ;;  %560 = vrot.lane.b32.xlu0 %v555_v50, %s1422_s9  ;;  %v1047_v51 = vpack.c.bf16 %v721_v48, %v719_v47  ;;  %v743_v41 = vld [vmem:[#allocation10 + $0xe0] sm:$0xff] }
 0x44e   : > { %1044 = vmatpush1.bf16.msra.mxu0 %v1043_v45 }
 0x44f   : > { %1046 = vmatprep.subr.bf16.mxu0 %v1045_v46 }
 0x452   : > { %1048 = vmatpush1.bf16.msra.mxu0 %v1047_v51 }
 0x4bf   : > { %v563_v12 = vpop.permute.xlu1 %562  ;;  %v561_v14 = vpop.permute.xlu0 %560 }
 0x4c0   : > { %v565_v16 = vsel %vm564_vm10, %v561_v14, %v563_v12  ;;  %v566_v17 = vsel %vm564_vm10, %v563_v12, %v561_v14  ;;  %v740_v12 = vld [vmem:[#allocation10 + $0xc8] sm:$0xff]  ;;  %v742_v14 = vld [vmem:[#allocation10 + $0xd8] sm:$0xff] }
 0x4c1   : > { %v567_v25 = vmax.f32 %v555_v50, %v566_v17  ;;  %v568_v26 = vmax.f32 %v556_v49, %v565_v16  ;;  %v1065_v16 = vpack.c.bf16 %v742_v14, %v740_v12  ;;  %v739_v17 = vld [vmem:[#allocation10 + $0xc0] sm:$0xff] }
 0x4c2   : > { %v1067_v21 = vpack.c.bf16 %v741_v19, %v739_v17 }
 0x4c3   : > { %v1753_v35 = vsel %vm1743_vm11, %v567_v25, %v555_v50  ;;  %v1757_v36 = vsel %vm1747_vm12, %v568_v26, %v556_v49  ;;  %v724_v49 = vld [vmem:[#allocation10 + $0x48] sm:$0xff]  ;;  %v726_v50 = vld [vmem:[#allocation10 + $0x58] sm:$0xff]  ;;  %v602_v25 = vrot.slane %v594_v23, %v1700_v11 }
 0x4c4   : > { %585 = vrot.lane.b32.xlu0 %v1753_v35, %s1423_s15  ;;  %587 = vrot.lane.b32.xlu1 %v1757_v36, %s1423_s15  ;;  %v1049_v52 = vpack.c.bf16 %v726_v50, %v724_v49 }
 0x4c5   : > { %vm604_vm0 = vcmp.eq.s32.totalorder %v602_v25, 1 }
 0x4c6   : > { %1050 = vmatprep.subr.bf16.mxu0 %v1049_v52 }
 0x4c7   : > { %1052 = vmatpush1.bf16.msra.mxu0 %v1051_v57 }
 0x4c8   : > { %1054 = vmatprep.subr.bf16.mxu0 %v1053_v58 }
 0x4cb   : > { %1056 = vmatpush1.bf16.msra.mxu0 %v1055_v63 }
 0x4cc   : > { %1058 = vmatprep.subr.bf16.mxu0 %v1057_v1 }
 0x4cf   : > { %1060 = vmatpush1.bf16.msra.mxu0 %v1059_v6 }
 0x4d0   : > { %1062 = vmatprep.subr.bf16.mxu0 %v1061_v7 }
 0x4d3   : > { %1064 = vmatpush1.bf16.msra.mxu0 %v1063_v15 }
 0x4d4   : > { %1066 = vmatprep.subr.bf16.mxu0 %v1065_v16 }
 0x4d7   : > { %1068 = vmatpush1.bf16.msra.mxu0 %v1067_v21 }
 0x4d8   : > { %1070 = vmatprep.subr.bf16.mxu0 %v1069_v40 }
 0x536   : > { %v586_v26 = vpop.permute.xlu0 %585  ;;  %v588_v27 = vpop.permute.xlu1 %587 }
 0x537   : > { %v590_v28 = vsel %vm589_vm14, %v586_v26, %v588_v27  ;;  %v591_v29 = vsel %vm589_vm14, %v588_v27, %v586_v26 }
 0x538   : > { %v592_v30 = vmax.f32 %v1753_v35, %v590_v28  ;;  %v593_v31 = vmax.f32 %v1757_v36, %v591_v29 }
 0x53a   : > { %v605_v32 = vsel %vm603_vm15, %v592_v30, %v1753_v35  ;;  %v606_v0 = vsel %vm604_vm0, %v593_v31, %v1757_v36  ;;  %v745_v35 = vld [vmem:[#allocation10 + $0xf0] sm:$0xff] }
 0x53b   : > { %v607_v8 = vsub.f32 %v1702_v13, %v605_v32  ;;  %v608_v11 = vsub.f32 %v1706_v18, %v606_v0  ;;  %v1071_v36 = vpack.c.bf16 %v745_v35, %v743_v41  ;;  %v1424_v13 = vmov 0.0  }
 0x53c   : > { %811 = vmatprep.mubr.f32.mxu0 %v1424_v13 }
 0x53d   : > { %v609_v33 = vmul.f32 1.442695, %v607_v8  ;;  %v611_v20 = vmul.f32 1.442695, %v608_v11  ;;  %1072 = vmatpush1.bf16.msra.mxu0 %v1071_v36 }
 0x53f   : > { %1180 = vpow2.f32 %v609_v33 }
 0x540   : > { %1182 = vpow2.f32 %v611_v20 }
 0x549   : > { %v1181_v34 = vpop.eup %1180 }
 0x54a   : > { %v1183_v37 = vpop.eup %1182 }
 0x54b   : > { %709 = vmatprep.mubr.f32.mxu1 %v1183_v37 }
 0x54c   : > { %710 = vmatmul.mubr.f32.vlgmr.msra.gmra.mrb[0].mxu1 %v1181_v34 }
 0x61f   : > { %v1006_v18 = vpop.f32.mrb[0].mxu1 }
 0x620   : > { %v1007_v42 = vpop.f32.mrb[1].mxu1 }
 0x621   : > { %v1008_v43 = vadd.f32 %v1007_v42, %v1006_v18 }
 0x623   : > { %812 = vmatmul.mubr.f32.vlgmr.msra.gmra.mrb[4].mxu0 %v1008_v43 }
 0x6f6   : > { %v813_v44 = vpop.f32.mrb[4].mxu0 }
 0x6f7   : > { %1184 = vrcp.f32 %v813_v44  ;;  %v815_v45 = vpop.f32.mrb[5].mxu0 }
 0x6f8   : > { %1186 = vrcp.f32 %v815_v45 }
 0x701   : > { %v1185_v46 = vpop.eup %1184 }
 0x702   : > { %v1187_v47 = vpop.eup %1186  ;;  %v820_v48 = vmul.f32 %v1185_v46, %v1181_v34 }
 0x703   : > { %v821_v49 = vmul.f32 %v1187_v47, %v1183_v37 }
 0x704   : > { %822 = vst [vmem:[%s322_s8] sm:$0xff] %v820_v48 }
 0x705   : > { %823 = vst [vmem:[%s322_s8 + $0x8] sm:$0xff] %v821_v49 }
 0x706   : > { %1343 = shalt.err (!%p1340_p0)
}
 0x707   : > { %s1344_s20 = scalar_lea.hbm %s1776_s11, 256  ;;  %s1348_s15 = scalar_lea.hbm %s1826_s6, 512 }
 0x708   : > { %p1345_p2 = scmp.ne.s32.totalorder %s1776_s11, %s1344_s20  ;;  %p1349_p10 = scmp.lt.u32.totalorder %s1776_s11, %s1826_s6 }
 0x709   : > { %p1350_p11 = scmp.lt.u32.totalorder %s1348_s15, %s1344_s20  ;;  %p1352_p6 = scmp.lt.u32.totalorder %s1344_s20, %s1776_s11 }
 0x70a   : > { %p1346_p8 = pnand %p1345_p2, %p1848_p5 }
 0x70b   : > { %p1351_p1 = por %p1350_p11, %p1349_p10 }
 0x70c   : > { %p1347_p4 = pneg %p1346_p8 }
 0x70d   : > { %p1353_p7 = por %p1352_p6, %p1351_p1 }
 0x70f   : > { %p1354_p9 = pnand %p1353_p7, %p1347_p4 }
 0x711   : > { %1357 = shalt.err (!%p1354_p9)
}
 0x712   : > { %1091 = dma.vmem_to_hbm [thread:$0]  (%p1848_p5), %s1778_s7, 256, %s1776_s11, %s825_s12  }
 0x713 PF: > { %s851_s8 = sand.u32 1, %s1392_s21   ;;  %p1849_p12 = scmp.ne.s32.totalorder %s1837_s25, 0 }
 0x714   : > { %p1850_p3 = scmp.ge.s32.totalorder %s1404_s24, 2  ;;  %s852_s28 = scalar_lea.sflag [#allocation4], %s851_s8 }
 0x716   : > { %p1111_p13 = pnand %p1850_p3, %p1849_p12 }
 0x718   : > { %1387 = dma.done.wait (!%p1111_p13), %s852_s28, 256  }
 0x719   : > { %1389 = vsyncadd (!%p1111_p13), %s852_s28, 4294967040  ;;  %p21_p0 = scmp.ge.s32.totalorder %s1601_s19, 4   ;;  %s1851_s21 = smov %s1396_s22 }
 0x71a   : > { %s1852_s22 = smov %s1400_s23  ;;  %s1853_s23 = smov %s1612_s26 }
 0x71b   : > { %s1854_s24 = smov %s1601_s19  ;;  %23 = sbr.rel (!%p21_p0) target bundleno = 7 (0x7), region = 112 }
 0x722   :  { %857 = vsyncpa [#allocation3], 1 }
 0x723   :  { %859 = vsyncpa [#allocation3 + $0x1], 1 }
 0x724   :  { %860 = vsyncpa [#allocation6], 1 }
 0x725   :  { %861 = vsyncpa [#allocation9], 1 }
 0x726   :  { %862 = vsyncpa [#allocation4], 1 }
 0x727   :  { %864 = vsyncpa [#allocation4 + $0x1], 1 }

</bundles_post_ra>
